<compile_context>
chip_gen: v6e
topology: v6e:2x2x1
jax: 0.10.0
libtpu: 0.0.40
codegen_flags: <defaults>
</compile_context>

<pallas_src>
import functools

import jax
import jax.numpy as jnp
from jax.experimental import pallas as pl
from jax.experimental.pallas import tpu as pltpu

LANE = 128
SUBLANE = 8
NEG_BIG = -1e30  # bias for padded class columns -> exp() underflows to exactly 0


def _round_up(x, m):
    return (x + m - 1) // m * m


def mlp_ce_kernel(x_ref, lbl_ref, w1_ref, b1_ref, w2_ref, b2_ref,
                  loss_ref, acc_ref, *, inv_batch):
    """One batch tile: Linear -> ReLU -> Linear -> CE, summed into acc_ref."""
    pid = pl.program_id(0)

    @pl.when(pid == 0)
    def _init():
        acc_ref[...] = jnp.zeros_like(acc_ref)

    # Layer 1: bf16 MXU matmul, f32 accumulate; bias + ReLU in f32 on the VPU.
    h = jnp.dot(x_ref[...], w1_ref[...], preferred_element_type=jnp.float32)
    h = jnp.maximum(h + b1_ref[...], 0.0)

    # Layer 2: padded hidden units are exactly 0 after ReLU; padded class columns of
    # b2 carry -1e30 so they vanish from the softmax denominator.
    logits = jnp.dot(h.astype(w2_ref.dtype), w2_ref[...],
                     preferred_element_type=jnp.float32) + b2_ref[...]

    # Cross entropy with integer labels (no one-hot HBM input).
    labels = lbl_ref[...]                                          # (TB, 1) int32, -1 = pad row
    cols = jax.lax.broadcasted_iota(jnp.int32, logits.shape, 1)    # (TB, Cpad)
    m = jnp.max(logits, axis=-1, keepdims=True)
    lse = m + jnp.log(jnp.sum(jnp.exp(logits - m), axis=-1, keepdims=True))
    true_logit = jnp.sum(jnp.where(cols == labels, logits, 0.0),
                         axis=-1, keepdims=True)
    per_example = lse - true_logit                                 # (TB, 1)

    valid = (labels >= 0).astype(jnp.float32)                      # mask batch-padding rows
    acc_ref[...] += jnp.sum(per_example * valid, axis=0, keepdims=True)

    @pl.when(pid == pl.num_programs(0) - 1)
    def _finalize():
        # inv_batch = 1 / true (unpadded) global batch size, baked in at trace time.
        loss_ref[...] = acc_ref[...] * inv_batch


def prepare_params(params, d_pad, h_pad, c_pad):
    """Pad params to lane-aligned 2-D blocks (done once, outside the per-step call)."""
    w1, b1, w2, b2 = params
    d, h = w1.shape
    c = w2.shape[1]
    w1p = jnp.zeros((d_pad, h_pad), jnp.float32).at[:d, :h].set(w1).astype(jnp.bfloat16)
    b1p = jnp.zeros((1, h_pad), jnp.float32).at[0, :h].set(b1)
    w2p = jnp.zeros((h_pad, c_pad), jnp.float32).at[:h, :c].set(w2).astype(jnp.bfloat16)
    b2p = jnp.full((1, c_pad), NEG_BIG, jnp.float32).at[0, :c].set(b2)
    return w1p, b1p, w2p, b2p


@functools.partial(jax.jit, static_argnames=("block_b",))
def model_wrapper_loss(imgs, labels, padded_params, *, block_b=256):
    """imgs: (B,1,H,W) f32 NCHW; labels: (B,) int. Returns scalar f32 mean CE loss."""
    w1p, b1p, w2p, b2p = padded_params
    b = imgs.shape[0]
    d = imgs.shape[1] * imgs.shape[2] * imgs.shape[3]
    d_pad, h_pad = w1p.shape
    c_pad = w2p.shape[1]

    tb = min(block_b, _round_up(b, SUBLANE))       # batch tile
    b_pad = _round_up(b, tb)

    x = jnp.zeros((b_pad, d_pad), jnp.float32).at[:b, :d].set(imgs.reshape(b, d))
    x = x.astype(jnp.bfloat16)
    lbl = jnp.full((b_pad, 1), -1, jnp.int32).at[:b, 0].set(labels.astype(jnp.int32))

    kernel = functools.partial(mlp_ce_kernel, inv_batch=1.0 / float(b))

    # TODO(synk): on v7x, split the batch grid into a leading "parallel" axis over the
    # 2 TensorCores with per-core partial sums + a tiny cross-core combine.
    loss = pl.pallas_call(
        kernel,
        out_shape=jax.ShapeDtypeStruct((1, 1), jnp.float32),
        grid_spec=pltpu.PrefetchScalarGridSpec(
            num_scalar_prefetch=0,
            grid=(b_pad // tb,),
            in_specs=[
                pl.BlockSpec((tb, d_pad), lambda i: (i, 0)),      # x: batch-tiled, pipelined
                pl.BlockSpec((tb, 1), lambda i: (i, 0)),          # labels: batch-tiled
                pl.BlockSpec((d_pad, h_pad), lambda i: (0, 0)),   # w1: resident
                pl.BlockSpec((1, h_pad), lambda i: (0, 0)),       # b1
                pl.BlockSpec((h_pad, c_pad), lambda i: (0, 0)),   # w2
                pl.BlockSpec((1, c_pad), lambda i: (0, 0)),       # b2
            ],
            out_specs=pl.BlockSpec((1, 1), lambda i: (0, 0)),     # scalar loss
            scratch_shapes=[pltpu.VMEM((1, 1), jnp.float32)],     # loss accumulator
        ),
        compiler_params=pltpu.CompilerParams(
            dimension_semantics=("arbitrary",),   # batch axis reduces into the accumulator
            vmem_limit_bytes=32 << 20,            # fits v7x's 64 MiB/TC with headroom
        ),
    )(x, lbl, w1p, b1p, w2p, b2p)
    return loss[0, 0]


def init_params(key, d_in, hidden, n_classes):
    k1, k2 = jax.random.split(key)
    w1 = jax.random.normal(k1, (d_in, hidden), jnp.float32) * 0.05
    b1 = jnp.zeros((hidden,), jnp.float32)
    w2 = jax.random.normal(k2, (hidden, n_classes), jnp.float32) * 0.05
    b2 = jnp.zeros((n_classes,), jnp.float32)
    return w1, b1, w2, b2


def reference_loss(imgs, labels, params):
    # Pure-JAX f32 reference matching F.cross_entropy(backbone(imgs), labels).
    w1, b1, w2, b2 = params
    x = imgs.reshape(imgs.shape[0], -1)
    h = jnp.maximum(x @ w1 + b1, 0.0)
    logits = h @ w2 + b2
    logp = jax.nn.log_softmax(logits, axis=-1)
    nll = -jnp.take_along_axis(logp, labels[:, None], axis=-1)[:, 0]
    return jnp.mean(nll)


if __name__ == "__main__":
    B, C_IN, IMG, HIDDEN, N_CLASSES = 8, 1, 16, 32, 10
    key = jax.random.PRNGKey(0)
    k_img, k_lbl, k_param = jax.random.split(key, 3)

    imgs = jax.random.normal(k_img, (B, C_IN, IMG, IMG), jnp.float32)   # NCHW
    labels = jax.random.randint(k_lbl, (B,), 0, N_CLASSES, jnp.int32)
    params = init_params(k_param, C_IN * IMG * IMG, HIDDEN, N_CLASSES)

    D = C_IN * IMG * IMG
    padded_params = prepare_params(
        params,
        d_pad=_round_up(D, LANE),
        h_pad=_round_up(HIDDEN, LANE),
        c_pad=_round_up(N_CLASSES, LANE),
    )

    loss = model_wrapper_loss(imgs, labels, padded_params)
    jax.block_until_ready(loss)

    ref = reference_loss(imgs, labels, params)
    # bf16 MXU inputs => small quantization error vs the f32 reference.
    assert jnp.allclose(loss, ref, rtol=2e-2, atol=2e-2), (loss, ref)

    print("KERNEL_OK")
</pallas_src>

<mosaic_0001>
module attributes {stable_mosaic.version = 11 : i64} {
  func.func @mlp_ce_kernel(%arg0: i32, %arg1: memref<8x256xbf16, #tpu.memory_space<vmem>>, %arg2: memref<8x1xi32, #tpu.memory_space<vmem>>, %arg3: memref<256x128xbf16, #tpu.memory_space<vmem>>, %arg4: memref<1x128xf32, #tpu.memory_space<vmem>>, %arg5: memref<128x128xbf16, #tpu.memory_space<vmem>>, %arg6: memref<1x128xf32, #tpu.memory_space<vmem>>, %arg7: memref<1x1xf32, #tpu.memory_space<vmem>>, %arg8: memref<1x1xf32, #tpu.memory_space<vmem>>) attributes {dimension_semantics = [#tpu.dimension_semantics<arbitrary>], iteration_bounds = array<i64: 1>, scalar_prefetch = 0 : i64, scratch_operands = 1 : i64, tpu.core_type = #tpu.core_type<tc>, window_params = [{transform_indices = @transform_0, window_bounds = array<i64: 8, 256>}, {transform_indices = @transform_1, window_bounds = array<i64: 8, 1>}, {pipeline_mode = #tpu.pipeline_mode<synchronous>, transform_indices = @transform_2, window_bounds = array<i64: 256, 128>}, {pipeline_mode = #tpu.pipeline_mode<synchronous>, transform_indices = @transform_3, window_bounds = array<i64: 1, 128>}, {pipeline_mode = #tpu.pipeline_mode<synchronous>, transform_indices = @transform_4, window_bounds = array<i64: 128, 128>}, {pipeline_mode = #tpu.pipeline_mode<synchronous>, transform_indices = @transform_5, window_bounds = array<i64: 1, 128>}, {pipeline_mode = #tpu.pipeline_mode<synchronous>, transform_indices = @transform_6, window_bounds = array<i64: 1, 1>}]} {
    %c0_i32 = arith.constant 0 : i32
    %0 = arith.cmpi eq, %arg0, %c0_i32 : i32
    %1 = arith.extui %0 : i1 to i32
    %c0_i32_0 = arith.constant 0 : i32
    %2 = arith.cmpi ne, %1, %c0_i32_0 : i32
    scf.if %2 {
      %cst_26 = arith.constant 0.000000e+00 : f32
      %48 = vector.broadcast %cst_26 : f32 to vector<1x1xf32>
      %c0_27 = arith.constant 0 : index
      %c0_28 = arith.constant 0 : index
      %49 = vector.load %arg8[%c0_27, %c0_28] : memref<1x1xf32, #tpu.memory_space<vmem>>, vector<1x1xf32>
      tpu.vector_store %arg8[%c0_27, %c0_28], %48 {strides = array<i32>} : memref<1x1xf32, #tpu.memory_space<vmem>>, vector<1x1xf32>,
    } else {
    }
    %c0 = arith.constant 0 : index
    %c0_1 = arith.constant 0 : index
    %3 = vector.load %arg1[%c0, %c0_1] : memref<8x256xbf16, #tpu.memory_space<vmem>>, vector<8x256xbf16>
    %c0_2 = arith.constant 0 : index
    %c0_3 = arith.constant 0 : index
    %4 = vector.load %arg3[%c0_2, %c0_3] : memref<256x128xbf16, #tpu.memory_space<vmem>>, vector<256x128xbf16>
    %cst = arith.constant dense<0.000000e+00> : vector<8x128xf32>
    %5 = tpu.matmul %3, %4, %cst {dimension_numbers = #tpu.dot_dimension_numbers<[1], [0], [0], [1], [0, 0, 1, 1], [], []>} : vector<8x256xbf16>, vector<256x128xbf16>, vector<8x128xf32> -> vector<8x128xf32>
    %c0_4 = arith.constant 0 : index
    %c0_5 = arith.constant 0 : index
    %6 = vector.load %arg4[%c0_4, %c0_5] : memref<1x128xf32, #tpu.memory_space<vmem>>, vector<1x128xf32>
    %7 = vector.broadcast %6 : vector<1x128xf32> to vector<8x128xf32>
    %8 = arith.addf %5, %7 : vector<8x128xf32>
    %cst_6 = arith.constant 0.000000e+00 : f32
    %9 = vector.broadcast %cst_6 : f32 to vector<8x128xf32>
    %10 = arith.maximumf %8, %9 : vector<8x128xf32>
    %11 = arith.truncf %10 : vector<8x128xf32> to vector<8x128xbf16>
    %c0_7 = arith.constant 0 : index
    %c0_8 = arith.constant 0 : index
    %12 = vector.load %arg5[%c0_7, %c0_8] : memref<128x128xbf16, #tpu.memory_space<vmem>>, vector<128x128xbf16>
    %cst_9 = arith.constant dense<0.000000e+00> : vector<8x128xf32>
    %13 = tpu.matmul %11, %12, %cst_9 {dimension_numbers = #tpu.dot_dimension_numbers<[1], [0], [0], [1], [0, 0, 1, 1], [], []>} : vector<8x128xbf16>, vector<128x128xbf16>, vector<8x128xf32> -> vector<8x128xf32>
    %c0_10 = arith.constant 0 : index
    %c0_11 = arith.constant 0 : index
    %14 = vector.load %arg6[%c0_10, %c0_11] : memref<1x128xf32, #tpu.memory_space<vmem>>, vector<1x128xf32>
    %15 = vector.broadcast %14 : vector<1x128xf32> to vector<8x128xf32>
    %16 = arith.addf %13, %15 : vector<8x128xf32>
    %c0_12 = arith.constant 0 : index
    %c0_13 = arith.constant 0 : index
    %17 = vector.load %arg2[%c0_12, %c0_13] : memref<8x1xi32, #tpu.memory_space<vmem>>, vector<8x1xi32>
    %18 = tpu.iota {dimensions = array<i32: 1>} : vector<8x128xi32>
    %cst_14 = arith.constant dense<0xFF800000> : vector<8xf32>
    %19 = vector.multi_reduction <maximumf>, %16, %cst_14 [1] : vector<8x128xf32> to vector<8xf32>
    %20 = vector.shape_cast %19 : vector<8xf32> to vector<8x1xf32>
    %21 = vector.broadcast %20 : vector<8x1xf32> to vector<8x128xf32>
    %22 = arith.subf %16, %21 : vector<8x128xf32>
    %23 = math.exp %22 : vector<8x128xf32>
    %cst_15 = arith.constant dense<0.000000e+00> : vector<8xf32>
    %24 = vector.multi_reduction <add>, %23, %cst_15 [1] : vector<8x128xf32> to vector<8xf32>
    %25 = vector.shape_cast %24 : vector<8xf32> to vector<8x1xf32>
    %26 = math.log %25 : vector<8x1xf32>
    %27 = arith.addf %20, %26 : vector<8x1xf32>
    %28 = vector.broadcast %17 : vector<8x1xi32> to vector<8x128xi32>
    %29 = arith.cmpi eq, %18, %28 : vector<8x128xi32>
    %cst_16 = arith.constant 0.000000e+00 : f32
    %30 = vector.broadcast %cst_16 : f32 to vector<8x128xf32>
    %31 = arith.select %29, %16, %30 : vector<8x128xi1>, vector<8x128xf32>
    %cst_17 = arith.constant dense<0.000000e+00> : vector<8xf32>
    %32 = vector.multi_reduction <add>, %31, %cst_17 [1] : vector<8x128xf32> to vector<8xf32>
    %33 = vector.shape_cast %32 : vector<8xf32> to vector<8x1xf32>
    %34 = arith.subf %27, %33 : vector<8x1xf32>
    %c0_i32_18 = arith.constant 0 : i32
    %35 = vector.broadcast %c0_i32_18 : i32 to vector<8x1xi32>
    %36 = arith.cmpi sge, %17, %35 : vector<8x1xi32>
    %37 = arith.extui %36 : vector<8x1xi1> to vector<8x1xi32>
    %38 = arith.sitofp %37 : vector<8x1xi32> to vector<8x1xf32>
    %c0_19 = arith.constant 0 : index
    %c0_20 = arith.constant 0 : index
    %39 = vector.load %arg8[%c0_19, %c0_20] : memref<1x1xf32, #tpu.memory_space<vmem>>, vector<1x1xf32>
    %40 = arith.mulf %34, %38 : vector<8x1xf32>
    %cst_21 = arith.constant dense<0.000000e+00> : vector<1xf32>
    %41 = vector.multi_reduction <add>, %40, %cst_21 [0] : vector<8x1xf32> to vector<1xf32>
    %42 = vector.shape_cast %41 : vector<1xf32> to vector<1x1xf32>
    %43 = arith.addf %39, %42 : vector<1x1xf32>
    %c0_22 = arith.constant 0 : index
    %c0_23 = arith.constant 0 : index
    %44 = vector.load %arg8[%c0_22, %c0_23] : memref<1x1xf32, #tpu.memory_space<vmem>>, vector<1x1xf32>
    tpu.vector_store %arg8[%c0_22, %c0_23], %43 {strides = array<i32>} : memref<1x1xf32, #tpu.memory_space<vmem>>, vector<1x1xf32>,
    %c0_i32_24 = arith.constant 0 : i32
    %45 = arith.cmpi eq, %arg0, %c0_i32_24 : i32
    %46 = arith.extui %45 : i1 to i32
    %c0_i32_25 = arith.constant 0 : i32
    %47 = arith.cmpi ne, %46, %c0_i32_25 : i32
    scf.if %47 {
      %c0_26 = arith.constant 0 : index
      %c0_27 = arith.constant 0 : index
      %48 = vector.load %arg8[%c0_26, %c0_27] : memref<1x1xf32, #tpu.memory_space<vmem>>, vector<1x1xf32>
      %cst_28 = arith.constant 1.250000e-01 : f32
      %49 = vector.broadcast %cst_28 : f32 to vector<1x1xf32>
      %50 = arith.mulf %48, %49 : vector<1x1xf32>
      %c0_29 = arith.constant 0 : index
      %c0_30 = arith.constant 0 : index
      %51 = vector.load %arg7[%c0_29, %c0_30] : memref<1x1xf32, #tpu.memory_space<vmem>>, vector<1x1xf32>
      tpu.vector_store %arg7[%c0_29, %c0_30], %50 {strides = array<i32>} : memref<1x1xf32, #tpu.memory_space<vmem>>, vector<1x1xf32>,
    } else {
    }
    return
  }
  func.func @transform_0(%arg0: i32) -> (i32, i32) {
    %c0_i32 = arith.constant 0 : i32
    %c0_i32_0 = arith.constant 0 : i32
    return %arg0, %c0_i32 : i32, i32
  }
  func.func @transform_1(%arg0: i32) -> (i32, i32) {
    %c0_i32 = arith.constant 0 : i32
    %c0_i32_0 = arith.constant 0 : i32
    return %arg0, %c0_i32 : i32, i32
  }
  func.func @transform_2(%arg0: i32) -> (i32, i32) {
    %c0_i32 = arith.constant 0 : i32
    %c0_i32_0 = arith.constant 0 : i32
    %c0_i32_1 = arith.constant 0 : i32
    return %c0_i32, %c0_i32_0 : i32, i32
  }
  func.func @transform_3(%arg0: i32) -> (i32, i32) {
    %c0_i32 = arith.constant 0 : i32
    %c0_i32_0 = arith.constant 0 : i32
    %c0_i32_1 = arith.constant 0 : i32
    return %c0_i32, %c0_i32_0 : i32, i32
  }
  func.func @transform_4(%arg0: i32) -> (i32, i32) {
    %c0_i32 = arith.constant 0 : i32
    %c0_i32_0 = arith.constant 0 : i32
    %c0_i32_1 = arith.constant 0 : i32
    return %c0_i32, %c0_i32_0 : i32, i32
  }
  func.func @transform_5(%arg0: i32) -> (i32, i32) {
    %c0_i32 = arith.constant 0 : i32
    %c0_i32_0 = arith.constant 0 : i32
    %c0_i32_1 = arith.constant 0 : i32
    return %c0_i32, %c0_i32_0 : i32, i32
  }
  func.func @transform_6(%arg0: i32) -> (i32, i32) {
    %c0_i32 = arith.constant 0 : i32
    %c0_i32_0 = arith.constant 0 : i32
    %c0_i32_1 = arith.constant 0 : i32
    return %c0_i32, %c0_i32_0 : i32, i32
  }
}

</mosaic_0001>

<bundles_post_ra>
// kernel: model_wrapper_loss.1
= control target key start
LH: loop header
LB: loop body
LE: loop exit
PB: predicated region body
PF: predicated region fallthrough
CT: control target
= control target key end

     0   :  { %v521_v2 = vmov 0.0   ;;  %s661_s0 = inlined_call_operand.vmem [shape: bf16[8,256], index: 0, kind: input, shape index: {}]   ;;  %s662_s1 = inlined_call_operand.vmem [shape: s32[8,1], index: 1, kind: input, shape index: {}]   ;;  %s663_s2 = inlined_call_operand.vmem [shape: bf16[256,128], index: 2, kind: input, shape index: {}]   ;;  %s664_s3 = inlined_call_operand.vmem [shape: f32[1,128], index: 3, kind: input, shape index: {}]   ;;  %s665_s4 = inlined_call_operand.vmem [shape: bf16[128,128], index: 4, kind: input, shape index: {}]   ;;  %s666_s5 = inlined_call_operand.vmem [shape: f32[1,128], index: 5, kind: input, shape index: {}]   ;;  %s667_s6 = inlined_call_operand.hbm [shape: f32[1,1], index: 6, kind: output, shape index: {}]  }
   0x1   :  { %v469_v0 = vld [vmem:[%s663_s2 + $0x78] sm:$0xff]   ;;  %444 = vmatprep.subr.bf16.mxu1 %v521_v2  ;;  %v471_v3 = vld [vmem:[%s663_s2 + $0x70] sm:$0xff]   ;;  %v473_v5 = vld [vmem:[%s663_s2 + $0x68] sm:$0xff]  }
   0x2   :  { %v470_v1 = vld [vmem:[%s663_s2 + $0x38] sm:$0xff]   ;;  %413 = vmatprep.subr.bf16.mxu0 %v469_v0  ;;  %v472_v4 = vld [vmem:[%s663_s2 + $0x30] sm:$0xff]   ;;  %v474_v6 = vld [vmem:[%s663_s2 + $0x28] sm:$0xff]  }
   0x3   :  { %414 = vmatpush3.bf16.msra.mxu0 %v470_v1  ;;  %v475_v7 = vld [vmem:[%s663_s2 + $0x60] sm:$0xff]   ;;  %v477_v9 = vld [vmem:[%s663_s2 + $0x58] sm:$0xff]   ;;  %v479_v11 = vld [vmem:[%s663_s2 + $0x50] sm:$0xff]  }
   0x4   :  { %415 = vmatprep.subr.bf16.mxu0 %v471_v3  ;;  %v476_v8 = vld [vmem:[%s663_s2 + $0x20] sm:$0xff]   ;;  %v478_v10 = vld [vmem:[%s663_s2 + $0x18] sm:$0xff]   ;;  %v480_v15 = vld [vmem:[%s663_s2 + $0x10] sm:$0xff]  }
   0x5   :  { %v31_v12 = vld [vmem:[%s661_s0] sm:$0xff]  ;;  %v487_v14 = vld [vmem:[%s665_s4 + $0x38] sm:$0xff]   ;;  %v481_v16 = vld [vmem:[%s663_s2 + $0x48] sm:$0xff]  }
   0x6   :  { %v386_v13 = vcombine.high %v31_v12, %v31_v12  ;;  %445 = vmatpush3.bf16.msra.mxu1 %v487_v14  ;;  %v488_v17 = vld [vmem:[%s665_s4 + $0x30] sm:$0xff]   ;;  %v482_v18 = vld [vmem:[%s663_s2 + $0x8] sm:$0xff]  }
   0x7   :  { %416 = vmatpush3.bf16.msra.mxu0 %v472_v4  ;;  %446 = vmatprep.subr.bf16.mxu1 %v521_v2 }
   0x8   :  { %417 = vmatprep.subr.bf16.mxu0 %v473_v5  ;;  %206 = vmatprep.mubr.bf16.mxu0 %v386_v13 }
   0xb   :  { %418 = vmatpush3.bf16.msra.mxu0 %v474_v6 }
   0xc   :  { %419 = vmatprep.subr.bf16.mxu0 %v475_v7 }
   0xf   :  { %420 = vmatpush3.bf16.msra.mxu0 %v476_v8 }
  0x10   :  { %421 = vmatprep.subr.bf16.mxu0 %v477_v9 }
  0x13   :  { %422 = vmatpush3.bf16.msra.mxu0 %v478_v10 }
  0x14   :  { %423 = vmatprep.subr.bf16.mxu0 %v479_v11 }
  0x17   :  { %424 = vmatpush3.bf16.msra.mxu0 %v480_v15 }
  0x18   :  { %11 = vsyncpa [#allocation4], 0  ;;  %425 = vmatprep.subr.bf16.mxu0 %v481_v16  ;;  %v483_v19 = vld [vmem:[%s663_s2 + $0x40] sm:$0xff]   ;;  %447 = vmatpush3.bf16.msra.mxu1 %v488_v17  ;;  %v489_v20 = vld [vmem:[%s665_s4 + $0x28] sm:$0xff]   ;;  %v385_v23 = vcombine.low %v31_v12, %v31_v12  ;;  %vm522_vm0 = vmmov 0   ;;  %v523_v37 = vmov 0   ;;  %v328_v48 = vlaneseq }
  0x19   :  { %448 = vmatprep.subr.bf16.mxu1 %v521_v2  ;;  %v484_v21 = vld [vmem:[%s663_s2] sm:$0xff]   ;;  %v491_v24 = vld [vmem:[%s665_s4 + $0x18] sm:$0xff]   ;;  %v492_v25 = vld [vmem:[%s665_s4 + $0x10] sm:$0xff]   ;;  %460 = vmatprep.mubr.msk.bf16.mxu1 %vm522_vm0, %v521_v2  ;;  %vm29_vm2 = vcmask 0   ;;  %vm353_vm4 = vcmask 7168  }
  0x1a   :  { %v490_v22 = vld [vmem:[%s665_s4 + $0x20] sm:$0xff]   ;;  %v493_v26 = vld [vmem:[%s665_s4 + $0x8] sm:$0xff]   ;;  %468 = vset.pattern.permute.xlu0 %v523_v37  ;;  %v329_v49 = vand.u32 127, %v328_v48  ;;  %30 = vst.msk [vmem:[#allocation2] sm:$0x1] %vm29_vm2, %v521_v2 }
  0x1b   :  { %426 = vmatpush3.bf16.msra.mxu0 %v482_v18  ;;  %v494_v27 = vld [vmem:[%s665_s4] sm:$0xff]  }
  0x1c   :  { %427 = vmatprep.subr.bf16.mxu0 %v483_v19  ;;  %449 = vmatpush3.bf16.msra.mxu1 %v489_v20  ;;  %v384_v29 = vld [vmem:[%s664_s3] ss:$0 sm:$0xff] }
  0x1d   :  { %450 = vmatprep.subr.bf16.mxu1 %v521_v2  ;;  %v403_v38 = vld [vmem:[%s666_s5] ss:$0 sm:$0xff] }
  0x1e   :  { %v327_v44 = vld [vmem:[%s662_s1] sm:$0xff]  ;;  %s524_s1 = smov [#allocation3]  }
  0x1f   :  { %428 = vmatpush3.bf16.msra.mxu0 %v484_v21  ;;  %vm348_vm3 = vcmp.ge.s32.totalorder %v327_v44, 0  ;;  %s376_s5 = sshll.u32 %s524_s1, 4  ;;  %s377_s5 = int_to_ptr.vmem [resolvable:$true] %s376_s5 }
  0x20   :  { %451 = vmatpush3.bf16.msra.mxu1 %v490_v22  ;;  %v412_v57 = vsel %vm348_vm3, 1.0, %v521_v2  ;;  %s499_s25 = scalar_lea.vmem %s377_s5, 16  ;;  %s503_s26 = scalar_lea.vmem %s377_s5, 32 }
  0x21   :  { %452 = vmatprep.subr.bf16.mxu1 %v521_v2  ;;  %v351_v4 = vld [vmem:[#allocation2] sm:$0x1]  ;;  %p500_p0 = scmp.ne.s32.totalorder %s377_s5, %s499_s25  ;;  %p504_p1 = scmp.lt.s32.totalorder %s377_s5, %s377_s5 }
  0x22   :  { %207 = vmatmul.mubr.bf16.vlgmr.msra.gmra.mxu0 %v385_v23  ;;  %p505_p2 = scmp.lt.s32.totalorder %s503_s26, %s499_s25 }
  0x24   :  { %453 = vmatpush3.bf16.msra.mxu1 %v491_v24  ;;  %p506_p3 = por %p505_p2, %p504_p1 }
  0x25   :  { %454 = vmatprep.subr.bf16.mxu1 %v521_v2 }
  0x26   :  { %p507_p4 = pnand %p506_p3, %p500_p0 }
  0x28   :  { %455 = vmatpush3.bf16.msra.mxu1 %v492_v25 }
  0x29   :  { %456 = vmatprep.subr.bf16.mxu1 %v521_v2 }
  0x2c   :  { %457 = vmatpush3.bf16.msra.mxu1 %v493_v26 }
  0x2d   :  { %458 = vmatprep.subr.bf16.mxu1 %v521_v2 }
  0x30   :  { %459 = vmatpush3.bf16.msra.mxu1 %v494_v27 }
  0xe2   :  { %v429_v28 = vpop.f32.mrf.mxu0 }
  0xe4   :  { %v430_v30 = vpop.f32.mrf.mxu0 }
  0xe5   :  { %v431_v31 = vadd.f32 %v430_v30, %v429_v28 }
  0xe6   :  { %v432_v32 = vpop.f32.mrf.mxu0 }
  0xe7   :  { %v209_v33 = vadd.f32 %v431_v31, %v384_v29 }
  0xe8   :  { %v433_v34 = vpop.f32.mrf.mxu0 }
  0xe9   :  { %v214_v35 = vmax.f32 %v209_v33, 0.0 }
  0xeb   :  { %v215_v36 = vpack.c.bf16 %v214_v35, %v214_v35 }
  0xed   :  { %461 = vmatmul.mubr.bf16.vlgmr.msra.gmra.mxu1 %v215_v36 }
 0x1ad   :  { %v321_v39 = vpop.f32.mrf.mxu1 }
 0x1ae   :  { %v322_v40 = vadd.f32 %v403_v38, %v321_v39 }
 0x1af   :  { %v462_v41 = vpop.f32.mrf.mxu1 }
 0x1b0   :  { %330 = vmax.xlane.f32.xlu0 %v322_v40 }
 0x1b1   :  { %v324_v42 = vpop.f32.mrf.mxu1 }
 0x1b3   :  { %v463_v43 = vpop.f32.mrf.mxu1 }
 0x1c6   :  { %341 = vperm.xlu0 %468, %v327_v44  }
 0x239   :  { %v331_v45 = vpop.xlane.xlu0 %330 }
 0x23a   :  { %v332_v46 = vsub.f32 %v322_v40, %v331_v45 }
 0x23c   :  { %v333_v47 = vmul.f32 1.442695, %v332_v46 }
 0x23e   :  { %495 = vpow2.f32 %v333_v47 }
 0x241   :  { %v342_v50 = vpop.permute.xlu0 %341 }
 0x242   :  { %vm343_vm1 = vcmp.eq.s32.totalorder %v329_v49, %v342_v50 }
 0x243   :  { %v344_v52 = vsel %vm343_vm1, %v322_v40, 0.0 }
 0x24b   :  { %v496_v51 = vpop.eup %495 }
 0x24c   :  { %335 = vadd.xlane.f32.xlu1 %v496_v51 }
 0x250   :  { %345 = vadd.xlane.f32.xlu1 %v344_v52 }
 0x2d5   :  { %v336_v53 = vpop.xlane.xlu1 %335 }
 0x2d6   :  { %497 = vlog2.f32 %v336_v53 }
 0x2d9   :  { %v346_v58 = vpop.xlane.xlu1 %345 }
 0x2e3   :  { %v498_v54 = vpop.eup %497 }
 0x2e4   :  { %v338_v55 = vmul.f32 0.6931472, %v498_v54 }
 0x2e6   :  { %v339_v56 = vadd.f32 %v338_v55, %v331_v45 }
 0x2e8   :  { %v347_v59 = vsub.f32 %v339_v56, %v346_v58 }
 0x2ea   :  { %v352_v60 = vmul.f32 %v412_v57, %v347_v59 }
 0x2ec   :  { %v354_v61 = vsel %vm353_vm4, %v352_v60, 0.0 }
 0x2ed   :  { %v355_v62 = vrot.slane %v354_v61, 4 }
 0x2ef   :  { %v356_v63 = vadd.f32 %v355_v62, %v354_v61 }
 0x2f1   :  { %v357_v0 = vrot.slane %v356_v63, 2 }
 0x2f3   :  { %v358_v1 = vadd.f32 %v357_v0, %v356_v63 }
 0x2f5   :  { %v359_v3 = vrot.slane %v358_v1, 1 }
 0x2f7   :  { %v360_v5 = vadd.f32 %v359_v3, %v358_v1 }
 0x2f9   :  { %v361_v6 = vadd.f32 %v360_v5, %v351_v4 }
 0x2fb   :  { %363 = vst.msk [vmem:[#allocation2] sm:$0x1] %vm29_vm2, %v361_v6 }
 0x302   :  { %v367_v7 = vld [vmem:[#allocation2] sm:$0x1] }
 0x303   :  { %v368_v8 = vmul.f32 0.125, %v367_v7 }
 0x305   :  { %369 = vst.msk [vmem:[#allocation3] sm:$0x1] %vm29_vm2, %v368_v8 }
 0x306   :  { %510 = shalt.err (!%p507_p4)
}
 0x307   :  { %379 = dma.vmem_to_hbm [thread:$0]  %s377_s5, 16, %s667_s6, [#allocation4]  }
 0x308   :  { %519 = dma.done.wait [#allocation4], 16  }
 0x309   :  { %520 = vsyncadd [#allocation4], 4294967280 }
 0x30a   :  { %383 = vsyncpa [#allocation4], 1 }

</bundles_post_ra>
